<compile_context>
chip_gen: v7x
topology: tpu7x:2x2x1
jax: 0.10.0
libtpu: 0.0.40
codegen_flags: <defaults>
</compile_context>

<pallas_src>
import functools

import jax
import jax.numpy as jnp
from jax import lax
from jax.experimental import pallas as pl
from jax.experimental.pallas import tpu as pltpu


# ---------------------------------------------------------------------------
# AddCoords (plain-JAX glue: iota / concat only, no hot-path compute)
# ---------------------------------------------------------------------------
def add_coords(x, with_r=False):
    """x: (B, C, H, W) NCHW.  Returns (B, C+2[+1], H, W)."""
    # TODO(synk): the numel()==0 empty-tensor fast path (_NewEmptyTensorOp) is
    # not reproduced; shapes here are always non-empty.
    B, C, H, W = x.shape
    if H < 2:
        xx = jnp.full((H, W), 0.5, jnp.float32)
    else:
        xx = lax.broadcasted_iota(jnp.float32, (H, W), 0) / (H - 1)
    if W < 2:
        yy = jnp.full((H, W), 0.5, jnp.float32)
    else:
        yy = lax.broadcasted_iota(jnp.float32, (H, W), 1) / (W - 1)
    xx = xx * 2.0 - 1.0   # coordinate along H axis (matches torch transpose(2,3))
    yy = yy * 2.0 - 1.0   # coordinate along W axis
    xx_b = jnp.broadcast_to(xx[None, None], (B, 1, H, W)).astype(x.dtype)
    yy_b = jnp.broadcast_to(yy[None, None], (B, 1, H, W)).astype(x.dtype)
    ret = jnp.concatenate([x, xx_b, yy_b], axis=1)
    if with_r:
        rr = jnp.sqrt((xx_b - 0.5) ** 2 + (yy_b - 0.5) ** 2).astype(x.dtype)
        ret = jnp.concatenate([ret, rr], axis=1)
    return ret


# ---------------------------------------------------------------------------
# Pallas conv kernel: one im2col matmul over lane-shifted views of the slab
# ---------------------------------------------------------------------------
def _coordconv_kernel(x_ref, w_ref, b_ref, o_ref, *, tap_offsets):
    # x_ref: (1, Cin_pad, L)        flattened zero-padded image (row stride Wp)
    # w_ref: (Cout, Kh*Kw*Cin_pad)  weights, K axis ordered (kh, kw, cin)
    # b_ref: (Cout, 1)
    # o_ref: (1, Cout, N)           N = Ho1*Wp: dense stride-1 output rows over
    #                               the full padded width (junk columns are
    #                               sliced off outside the kernel).
    n_out = o_ref.shape[2]
    x = x_ref[0]                                          # (Cin_pad, L): one load
    # Each conv tap is a static lane-shifted window of the flat slab; stack all
    # Kh*Kw of them (sublane-aligned: Cin_pad % 8 == 0) into one im2col matrix.
    cols = jnp.concatenate(
        [x[:, off:off + n_out] for off in tap_offsets], axis=0)
    acc = jnp.dot(w_ref[...], cols, preferred_element_type=jnp.float32)
    o_ref[0] = (acc + b_ref[...]).astype(o_ref.dtype)     # bias folded into store


# ---------------------------------------------------------------------------
# CoordConv2d wrapper
# ---------------------------------------------------------------------------
def _pair(v):
    return (v, v) if isinstance(v, int) else tuple(v)


def coord_conv2d(x, weight, bias=None, *, stride=1, padding=0, dilation=1,
                 with_r=False):
    """x: (B, Cin, H, W) NCHW; weight: (Cout, Cin+2[+1], Kh, Kw) OIHW;
       bias: (Cout,) or None.  Returns (B, Cout, Ho, Wo) NCHW."""
    # TODO(synk): groups > 1 is not implemented (default groups=1 only).
    s = _pair(stride)
    p = _pair(padding)
    d = _pair(dilation)

    aug = add_coords(x, with_r=with_r)                    # (B, Cin_aug, H, W)
    B, Cin, H, W = aug.shape
    Cout, Cin_w, Kh, Kw = weight.shape
    assert Cin_w == Cin, (Cin_w, Cin)

    Hp, Wp = H + 2 * p[0], W + 2 * p[1]
    # The kernel always produces the dense stride-1 (but dilated) result; the
    # wrapper downsamples afterwards for stride > 1.
    # TODO(synk): stride > 1 therefore does s[0]*s[1]x extra MXU work; hoist
    # the striding into the tap offsets / output map if that ever matters.
    Ho1 = Hp - d[0] * (Kh - 1)
    Wo1 = Wp - d[1] * (Kw - 1)
    n_out = Ho1 * Wp

    cin_pad = ((Cin + 7) // 8) * 8      # sublane-align channels -> aligned concat
    # Single pad: conv halo, channel round-up, plus one spare zero row at the
    # bottom so the last tap's flat window stays in bounds.
    x_pad = jnp.pad(aug, ((0, 0), (0, cin_pad - Cin),
                          (p[0], p[0] + 1), (p[1], p[1])))
    L = (Hp + 1) * Wp
    x_flat = x_pad.reshape(B, cin_pad, L)                 # free (contiguous) reshape

    # OIHW -> (Cout, Kh, Kw, Cin_pad) -> (Cout, Kh*Kw*Cin_pad); tiny, one-time.
    w_flat = jnp.pad(jnp.transpose(weight, (0, 2, 3, 1)),
                     ((0, 0), (0, 0), (0, 0), (0, cin_pad - Cin)))
    w_flat = w_flat.reshape(Cout, Kh * Kw * cin_pad)
    if bias is None:
        bias = jnp.zeros((Cout,), jnp.float32)
    b2 = bias.reshape(Cout, 1).astype(jnp.float32)

    tap_offsets = tuple(kh * d[0] * Wp + kw * d[1]
                        for kh in range(Kh) for kw in range(Kw))
    kernel = functools.partial(_coordconv_kernel, tap_offsets=tap_offsets)

    out_flat = pl.pallas_call(
        kernel,
        out_shape=jax.ShapeDtypeStruct((B, Cout, n_out), x.dtype),
        grid=(B,),
        in_specs=[
            pl.BlockSpec((1, cin_pad, L), lambda b: (b, 0, 0)),
            pl.BlockSpec((Cout, Kh * Kw * cin_pad), lambda b: (0, 0)),
            pl.BlockSpec((Cout, 1), lambda b: (0, 0)),
        ],
        out_specs=pl.BlockSpec((1, Cout, n_out), lambda b: (b, 0, 0)),
        compiler_params=pltpu.CompilerParams(
            dimension_semantics=("parallel",)),
    )(x_flat, w_flat, b2)

    # (B, Cout, Ho1*Wp) -> (B, Cout, Ho1, Wp) is a free reshape; keep only the
    # valid columns (and strided rows/columns when stride > 1).
    out_full = out_flat.reshape(B, Cout, Ho1, Wp)
    return out_full[:, :, ::s[0], :Wo1:s[1]]


# ---------------------------------------------------------------------------
# Demo / correctness check
# ---------------------------------------------------------------------------
if __name__ == "__main__":
    def _check(B, Cin, H, W, Cout, K, stride, padding, dilation, with_r):
        Cin_aug = Cin + (3 if with_r else 2)
        key = jax.random.PRNGKey(0)
        kx, kw, kb = jax.random.split(key, 3)
        x = jax.random.normal(kx, (B, Cin, H, W), dtype=jnp.float32)

        # Deterministic Conv2d-style init (uniform +/- 1/sqrt(fan_in)).
        fan_in = Cin_aug * K * K
        bound = 1.0 / (fan_in ** 0.5)
        weight = jax.random.uniform(kw, (Cout, Cin_aug, K, K),
                                    minval=-bound, maxval=bound,
                                    dtype=jnp.float32)
        bias = jax.random.uniform(kb, (Cout,), minval=-bound, maxval=bound,
                                  dtype=jnp.float32)

        out = coord_conv2d(x, weight, bias, stride=stride, padding=padding,
                           dilation=dilation, with_r=with_r)
        out = jax.block_until_ready(out)

        # Reference: same AddCoords + XLA conv (NCHW / OIHW).
        aug = add_coords(x, with_r=with_r)
        ref = lax.conv_general_dilated(
            aug, weight, window_strides=(stride, stride),
            padding=[(padding, padding), (padding, padding)],
            rhs_dilation=(dilation, dilation),
            dimension_numbers=("NCHW", "OIHW", "NCHW"),
        ) + bias[None, :, None, None]

        assert out.shape == ref.shape, (out.shape, ref.shape)
        err = float(jnp.max(jnp.abs(out - ref)))
        assert jnp.allclose(out, ref, rtol=1e-4, atol=1e-4), err

    # CoordConv2d(in_channels=4, out_channels=8, kernel_size=3,
    #             stride=1, padding=1, with_r=False) on (2, 4, 16, 16).
    _check(B=2, Cin=4, H=16, W=16, Cout=8, K=3,
           stride=1, padding=1, dilation=1, with_r=False)
    # with_r=True path, no padding.
    _check(B=2, Cin=3, H=8, W=8, Cout=8, K=3,
           stride=1, padding=0, dilation=1, with_r=True)
    print("KERNEL_OK")
</pallas_src>

<mosaic_0001>
module attributes {stable_mosaic.version = 11 : i64} {
  func.func @_coordconv_kernel(%arg0: i32, %arg1: memref<1x8x342xf32, #tpu.memory_space<vmem>>, %arg2: memref<8x72xf32, #tpu.memory_space<vmem>>, %arg3: memref<8x1xf32, #tpu.memory_space<vmem>>, %arg4: memref<1x8x288xf32, #tpu.memory_space<vmem>>) attributes {dimension_semantics = [#tpu.dimension_semantics<parallel>], iteration_bounds = array<i64: 2>, scalar_prefetch = 0 : i64, scratch_operands = 0 : i64, tpu.core_type = #tpu.core_type<tc>, window_params = [{transform_indices = @transform_0, window_bounds = array<i64: 1, 8, 342>}, {pipeline_mode = #tpu.pipeline_mode<synchronous>, transform_indices = @transform_1, window_bounds = array<i64: 8, 72>}, {pipeline_mode = #tpu.pipeline_mode<synchronous>, transform_indices = @transform_2, window_bounds = array<i64: 8, 1>}, {transform_indices = @transform_3, window_bounds = array<i64: 1, 8, 288>}]} {
    %c0 = arith.constant 0 : index
    %c0_0 = arith.constant 0 : index
    %c0_1 = arith.constant 0 : index
    %0 = vector.load %arg1[%c0, %c0_0, %c0_1] : memref<1x8x342xf32, #tpu.memory_space<vmem>>, vector<1x8x342xf32>
    %1 = vector.shape_cast %0 : vector<1x8x342xf32> to vector<8x342xf32>
    %2 = vector.extract_strided_slice %1 {offsets = [0, 0], sizes = [8, 288], strides = [1, 1]} : vector<8x342xf32> to vector<8x288xf32>
    %3 = vector.extract_strided_slice %1 {offsets = [0, 1], sizes = [8, 288], strides = [1, 1]} : vector<8x342xf32> to vector<8x288xf32>
    %4 = vector.extract_strided_slice %1 {offsets = [0, 2], sizes = [8, 288], strides = [1, 1]} : vector<8x342xf32> to vector<8x288xf32>
    %5 = vector.extract_strided_slice %1 {offsets = [0, 18], sizes = [8, 288], strides = [1, 1]} : vector<8x342xf32> to vector<8x288xf32>
    %6 = vector.extract_strided_slice %1 {offsets = [0, 19], sizes = [8, 288], strides = [1, 1]} : vector<8x342xf32> to vector<8x288xf32>
    %7 = vector.extract_strided_slice %1 {offsets = [0, 20], sizes = [8, 288], strides = [1, 1]} : vector<8x342xf32> to vector<8x288xf32>
    %8 = vector.extract_strided_slice %1 {offsets = [0, 36], sizes = [8, 288], strides = [1, 1]} : vector<8x342xf32> to vector<8x288xf32>
    %9 = vector.extract_strided_slice %1 {offsets = [0, 37], sizes = [8, 288], strides = [1, 1]} : vector<8x342xf32> to vector<8x288xf32>
    %10 = vector.extract_strided_slice %1 {offsets = [0, 38], sizes = [8, 288], strides = [1, 1]} : vector<8x342xf32> to vector<8x288xf32>
    %11 = tpu.concatenate %2, %3, %4, %5, %6, %7, %8, %9, %10 in 0 : vector<8x288xf32>, vector<8x288xf32>, vector<8x288xf32>, vector<8x288xf32>, vector<8x288xf32>, vector<8x288xf32>, vector<8x288xf32>, vector<8x288xf32>, vector<8x288xf32> -> vector<72x288xf32>
    %c0_2 = arith.constant 0 : index
    %c0_3 = arith.constant 0 : index
    %12 = vector.load %arg2[%c0_2, %c0_3] : memref<8x72xf32, #tpu.memory_space<vmem>>, vector<8x72xf32>
    %cst = arith.constant dense<0.000000e+00> : vector<8x288xf32>
    %13 = tpu.matmul %12, %11, %cst {dimension_numbers = #tpu.dot_dimension_numbers<[1], [0], [0], [1], [0, 0, 1, 1], [], []>} : vector<8x72xf32>, vector<72x288xf32>, vector<8x288xf32> -> vector<8x288xf32>
    %c0_4 = arith.constant 0 : index
    %c0_5 = arith.constant 0 : index
    %14 = vector.load %arg3[%c0_4, %c0_5] : memref<8x1xf32, #tpu.memory_space<vmem>>, vector<8x1xf32>
    %15 = vector.broadcast %14 : vector<8x1xf32> to vector<8x288xf32>
    %16 = arith.addf %13, %15 : vector<8x288xf32>
    %c0_6 = arith.constant 0 : index
    %c0_7 = arith.constant 0 : index
    %c0_8 = arith.constant 0 : index
    %17 = vector.load %arg4[%c0_6, %c0_7, %c0_8] : memref<1x8x288xf32, #tpu.memory_space<vmem>>, vector<1x8x288xf32>
    %18 = vector.shape_cast %17 : vector<1x8x288xf32> to vector<8x288xf32>
    %19 = vector.shape_cast %16 : vector<8x288xf32> to vector<1x8x288xf32>
    tpu.vector_store %arg4[%c0_6, %c0_7, %c0_8], %19 {strides = array<i32>} : memref<1x8x288xf32, #tpu.memory_space<vmem>>, vector<1x8x288xf32>,
    return
  }
  func.func @transform_0(%arg0: i32) -> (i32, i32, i32) {
    %c0_i32 = arith.constant 0 : i32
    %c0_i32_0 = arith.constant 0 : i32
    %c0_i32_1 = arith.constant 0 : i32
    return %arg0, %c0_i32, %c0_i32_0 : i32, i32, i32
  }
  func.func @transform_1(%arg0: i32) -> (i32, i32) {
    %c0_i32 = arith.constant 0 : i32
    %c0_i32_0 = arith.constant 0 : i32
    %c0_i32_1 = arith.constant 0 : i32
    return %c0_i32, %c0_i32_0 : i32, i32
  }
  func.func @transform_2(%arg0: i32) -> (i32, i32) {
    %c0_i32 = arith.constant 0 : i32
    %c0_i32_0 = arith.constant 0 : i32
    %c0_i32_1 = arith.constant 0 : i32
    return %c0_i32, %c0_i32_0 : i32, i32
  }
  func.func @transform_3(%arg0: i32) -> (i32, i32, i32) {
    %c0_i32 = arith.constant 0 : i32
    %c0_i32_0 = arith.constant 0 : i32
    %c0_i32_1 = arith.constant 0 : i32
    return %arg0, %c0_i32, %c0_i32_0 : i32, i32, i32
  }
}

</mosaic_0001>

<bundles_post_ra>
// kernel: tpu_custom_call.1
= control target key start
LH: loop header
LB: loop body
LE: loop exit
PB: predicated region body
PF: predicated region fallthrough
CT: control target
= control target key end

     0   :  { %8 = vsyncpa [#allocation3], 0  ;;  %s1006_s0 = inlined_call_operand.hbm [shape: f32[2,8,342], index: 0, kind: input, shape index: {}]   ;;  %s1007_s1 = inlined_call_operand.vmem [shape: f32[8,72], index: 1, kind: input, shape index: {}]   ;;  %s1008_s2 = inlined_call_operand.vmem [shape: f32[8,1], index: 2, kind: input, shape index: {}]   ;;  %s1009_s3 = inlined_call_operand.hbm [shape: f32[2,8,288], index: 3, kind: output, shape index: {}]  }
   0x1   :  { %10 = vsyncpa [#allocation3 + $0x1], 0 }
   0x2   :  { %11 = vsyncpa [#allocation4], 0 }
   0x3   :  { %13 = vsyncpa [#allocation4 + $0x1], 0  ;;  %s830_s12 = smov 0   ;;  %s832_s13 = smov 0  }
   0x4   :  { %s834_s14 = smov 0   ;;  %s836_s15 = smov 0  }
   0x5 LB: > { %s851_s16 = sadd.s32 4294967295, %s794_s15   ;;  %s530_s17 = sadd.s32 4294967294, %s794_s15   ;;  %s794_s15 = sphi %s836_s15, %s1023_s15   ;;  %s790_s14 = sphi %s834_s14, %s1022_s14   ;;  %s786_s13 = sphi %s832_s13, %s1021_s13   ;;  %s782_s12 = sphi %s830_s12, %s1020_s12  }
   0x6   : > { %s855_s18 = sadd.s32 1, %s794_s15   ;;  %s26_s19 = sadd.s32 1, %s790_s14 }
   0x7   : > { %s23_s20 = ssub.s32 %s794_s15, %s855_s18  ;;  %p33_p0 = scmp.ne.s32.totalorder %s790_s14, %s786_s13 }
   0x8   : > { %p24_p1 = scmp.eq.s32.totalorder %s23_s20, 0  ;;  %p34_p2 = scmp.eq.s32.totalorder %s794_s15, 0 }
   0x9   : > { %p39_p3 = scmp.ne.s32.totalorder %s786_s13, %s782_s12  ;;  %p40_p4 = scmp.eq.s32.totalorder %s851_s16, 0 }
   0xa   : > { %s867_s21 = scalar_select %p24_p1, %s790_s14, %s26_s19  }
   0xb   : > { %p35_p5 = por %p34_p2, %p33_p0  ;;  %p869_p6 = por %p40_p4, %p39_p3 }
   0xc   : > { %p105_p7 = scmp.eq.s32.totalorder %s851_s16, 1  ;;  %p111_p8 = scmp.eq.s32.totalorder %s530_s17, 1 }
   0xd   : > { %p615_p10 = scmp.lt.s32.totalorder %s794_s15, 2  ;;  %s137_s25 = sand.u32 1, %s790_s14  }
   0xe   : > { %p876_p11 = por %p105_p7, %p33_p0  ;;  %p880_p12 = por %p111_p8, %p39_p3 }
   0xf   : > { %s600_s26 = smul.u32 384, %s794_s15  ;;  %p891_p13 = pnand %p615_p10, %p35_p5 }
  0x10   : > { %s1012_s23 = scalar_select %p876_p11, 1, 0 }
  0x11   : > { %s1013_s24 = scalar_select %p880_p12, 1, 0 }
  0x12   : > { %s599_s27 = smul.u32 24, %s137_s25  ;;  %s889_s30 = scalar_lea.hbm %s1006_s0, %s600_s26 }
  0x13   : > { %s138_s7 = scalar_lea.sflag [#allocation3], %s137_s25  ;;  %s698_s8 = scalar_lea.hbm %s889_s30, 384 }
  0x14   : > { %s141_s5 = scalar_lea.vmem [#allocation2], %s599_s27  ;;  %p699_p2 = scmp.ne.s32.totalorder %s889_s30, %s698_s8 }
  0x15   : > { %s149_s6 = sshll.u32 %s141_s5, 4  ;;  %p700_p3 = pneg %p891_p13  ;;  %s896_s6 = int_to_ptr.vmem [resolvable:$true] %s149_s6 }
  0x16   : > { %s703_s11 = scalar_lea.hbm %s1006_s0, 768  ;;  %p704_p7 = scmp.lt.u32.totalorder %s889_s30, %s1006_s0 }
  0x17   : > { %p701_p4 = pnand %p700_p3, %p699_p2  ;;  %p705_p8 = scmp.lt.u32.totalorder %s703_s11, %s698_s8 }
  0x18   : > { %p707_p9 = scmp.lt.u32.totalorder %s698_s8, %s889_s30 }
  0x19   : > { %p702_p5 = pneg %p701_p4  ;;  %p706_p10 = por %p705_p8, %p704_p7 }
  0x1b   : > { %p708_p0 = por %p707_p9, %p706_p10 }
  0x1d   : > { %p709_p1 = pnand %p708_p0, %p702_p5 }
  0x1f   : > { %712 = shalt.err (!%p709_p1)
}
  0x20   : > { %s713_s20 = scalar_lea.vmem %s896_s6, 384  ;;  %s796_s25 = smov [#allocation2]  }
  0x21   : > { %p714_p2 = scmp.ne.s32.totalorder %s896_s6, %s713_s20  ;;  %s718_s26 = sshll.u32 %s796_s25, 4  ;;  %s719_s26 = int_to_ptr.vmem [resolvable:$false] %s718_s26 }
  0x22   : > { %s720_s27 = scalar_lea.vmem %s719_s26, 768  ;;  %p721_p11 = scmp.lt.s32.totalorder %s896_s6, %s719_s26 }
  0x23   : > { %p716_p4 = pnand %p714_p2, %p700_p3  ;;  %p722_p7 = scmp.lt.s32.totalorder %s720_s27, %s713_s20 }
  0x25   : > { %p717_p12 = pneg %p716_p4  ;;  %p723_p8 = por %p722_p7, %p721_p11 }
  0x27   : > { %p724_p9 = pnand %p723_p8, %p717_p12 }
  0x29   : > { %727 = shalt.err (!%p724_p9)
}
  0x2a   : > { %610 = dma.hbm_to_vmem [thread:$0]  (!%p891_p13), %s889_s30, 384, %s896_s6, %s138_s7  }
  0x2b   : > { %p1015_p0 = scmp.lt.s32.totalorder %s794_s15, 3  ;;  %p1016_p1 = scmp.ge.s32.totalorder %s794_s15, 1 }
  0x2d   : > { %p155_p3 = pnand %p1016_p1, %p1015_p0 }
  0x2e   : > { %s929_s28 = sand.u32 (!%p155_p3), 1, %s786_s13  }
  0x2f   : > { %158 = sbr.rel (%p155_p3) target bundleno = 436 (0x1b4), region = 32  ;;  %s161_s5 = scalar_lea.sflag (!%p155_p3), [#allocation3], %s929_s28 }
  0x30   : > { %s601_s29 = smul.u32 (!%p155_p3), 24, %s929_s28 }
  0x32   : > { %s164_s4 = scalar_lea.vmem (!%p155_p3), [#allocation2], %s601_s29 }
  0x36   : > { %773 = dma.done.wait (%p869_p6), %s161_s5, 384  }
  0x37   : > { %775 = vsyncadd (%p869_p6), %s161_s5, 4294966912  ;;  %v797_v0 = vmov 0.0|0.0   ;;  %v188_v1 = vld [vmem:[%s164_s4 + $0x8] sm:$0xff]  ;;  %v189_v2 = vld [vmem:[%s164_s4 + $0x10] sm:$0xff]  ;;  %s798_s30 = smov 126   ;;  %s799_s6 = smov 127  }
  0x38   : > { %587 = vmatprep.subr.bf16.mxu1 %v797_v0  ;;  %v666_v3 = vpack.i.bf16 %v189_v2, %v188_v1  ;;  %v187_v4 = vld [vmem:[%s164_s4] sm:$0xff]  ;;  %s800_s7 = smov 110   ;;  %s801_s8 = smov 108   ;;  %v803_v5 = vmov 0.0   ;;  %vm806_vm0 = vmmov 0   ;;  %v807_v6 = vmov 0  }
  0x39   : > { %s802_s22 = smov 109   ;;  %364 = vmatprep.mubr.f32.mxu0 %v803_v5  ;;  %s804_s9 = smov 91   ;;  %568 = vmatprep.mubr.msk.f32.mxu1 %vm806_vm0, %v803_v5  ;;  %v290_v7 = vld [vmem:[%s1008_s2] sm:$0xff]  ;;  %vm199_vm1 = vcmask 1039360   ;;  %vm223_vm2 = vcmask 900096   ;;  %vm211_vm3 = vcmask 1031168  }
  0x3a   : > { %667 = vrot.lane.b32.xlu1 %v666_v3, %s798_s30  ;;  %662 = vrot.lane.b32.xlu0 %v666_v3, %s799_s6  ;;  %s805_s10 = smov 92   ;;  %s808_s11 = smov 90   ;;  %vm247_vm4 = vcmask 883712   ;;  %vm235_vm5 = vcmask 891904   ;;  %vm271_vm6 = vcmask 744448   ;;  %vm259_vm7 = vcmask 752640  }
  0x3b   : > { %696 = vset.pattern.permute.xlu1 %v807_v6  ;;  %697 = vset.pattern.permute.xlu0 %v807_v6  ;;  %vm283_vm8 = vcmask 736256   ;;  %v289_v62 = vld [vmem:[%s1007_s1] sm:$0xff]  ;;  %vm296_vm9 = vcmask 588800   ;;  %vm443_vm10 = vcmask 261120   ;;  %s186_s26 = scalar_lea.vmem [#allocation5], %s601_s29  ;;  %s602_s27 = smul.u32 384, %s851_s16 }
  0x3c   : > { %s460_s5 = sshll.u32 %s186_s26, 4  ;;  %s446_s29 = scalar_lea.sflag [#allocation4], %s929_s28  ;;  %s964_s5 = int_to_ptr.vmem [resolvable:$true] %s460_s5 }
  0x3d   : > { %p1017_p11 = scmp.ne.s32.totalorder %s1012_s23, 0  ;;  %s809_s16 = smov [#allocation5]  }
  0x3e   : > { %672 = vrot.lane.b32.xlu1 %v666_v3, %s800_s7  ;;  %193 = vrot.lane.b32.xlu0 %v187_v4, %s799_s6  ;;  %s962_s6 = scalar_lea.hbm %s1009_s3, %s602_s27 }
  0x42   : > { %217 = vrot.lane.b32.xlu1 %v187_v4, %s800_s7  ;;  %205 = vrot.lane.b32.xlu0 %v187_v4, %s798_s30  ;;  %s728_s7 = scalar_lea.vmem %s964_s5, 384 }
  0x43   : > { %p729_p6 = scmp.ne.s32.totalorder %s964_s5, %s728_s7 }
  0x45   : > { %p730_p12 = pnand %p729_p6, %p1017_p11 }
  0x46   : > { %682 = vrot.lane.b32.xlu1 %v666_v3, %s801_s8  ;;  %677 = vrot.lane.b32.xlu0 %v666_v3, %s802_s22 }
  0x47   : > { %p731_p13 = pneg %p730_p12 }
  0x4a   : > { %241 = vrot.lane.b32.xlu1 %v187_v4, %s801_s8  ;;  %229 = vrot.lane.b32.xlu0 %v187_v4, %s802_s22  ;;  %s732_s8 = sshll.u32 %s809_s16, 4  ;;  %s733_s8 = int_to_ptr.vmem [resolvable:$false] %s732_s8 }
  0x4b   : > { %s734_s22 = scalar_lea.vmem %s733_s8, 768  ;;  %p735_p5 = scmp.lt.s32.totalorder %s964_s5, %s733_s8 }
  0x4c   : > { %p736_p10 = scmp.lt.s32.totalorder %s734_s22, %s728_s7 }
  0x4e   : > { %692 = vrot.lane.b32.xlu1 %v666_v3, %s804_s9  ;;  %687 = vrot.lane.b32.xlu0 %v666_v3, %s805_s10  ;;  %p737_p2 = por %p736_p10, %p735_p5 }
  0x50   : > { %p738_p4 = pnand %p737_p2, %p731_p13 }
  0x52   : > { %265 = vrot.lane.b32.xlu1 %v187_v4, %s804_s9  ;;  %253 = vrot.lane.b32.xlu0 %v187_v4, %s805_s10 }
  0x56   : > { %281 = vrot.lane.b32.xlu1 %v189_v2, %s808_s11  ;;  %279 = vrot.lane.b32.xlu0 %v188_v1, %s808_s11 }
  0x5a   : > { %277 = vrot.lane.b32.xlu0 %v187_v4, %s808_s11  ;;  %293 = vperm.xlu1 %696, %v290_v7  }
  0xac   : > { %v668_v8 = vpop.permute.xlu1 %667  ;;  %v663_v9 = vpop.permute.xlu0 %662 }
  0xad   : > { %v665_v10 = vunpack.i.h.bf16 %v663_v9  ;;  %v664_v11 = vunpack.i.l.bf16 %v663_v9  ;;  %v670_v12 = vunpack.i.h.bf16 %v668_v8  ;;  %v669_v13 = vunpack.i.l.bf16 %v668_v8 }
  0xaf   : > { %v588_v14 = vpack.c.bf16 %v665_v10, %v189_v2  ;;  %v201_v15 = vsel %vm199_vm1, %v664_v11, %v665_v10  ;;  %v213_v24 = vsel %vm211_vm3, %v669_v13, %v670_v12 }
  0xb0   : > { %v673_v16 = vpop.permute.xlu1 %672  ;;  %v194_v17 = vpop.permute.xlu0 %193  ;;  %v571_v18 = vpack.c.bf16 %v201_v15, %v188_v1 }
  0xb1   : > { %v675_v19 = vunpack.i.h.bf16 %v673_v16  ;;  %v674_v20 = vunpack.i.l.bf16 %v673_v16  ;;  %v200_v21 = vsel %vm199_vm1, %v194_v17, %v664_v11  ;;  %589 = vmatpush3.bf16.msra.mxu1 %v588_v14 }
  0xb2   : > { %572 = vmatprep.subr.bf16.mxu0 %v571_v18  ;;  %590 = vmatprep.subr.bf16.mxu1 %v797_v0  ;;  %v573_v22 = vpack.c.bf16 %v200_v21, %v187_v4 }
  0xb3   : > { %v591_v23 = vpack.c.bf16 %v675_v19, %v670_v12  ;;  %v225_v25 = vsel %vm223_vm2, %v674_v20, %v675_v19 }
  0xb4   : > { %v218_v26 = vpop.permute.xlu1 %217  ;;  %574 = vmatpush1.bf16.msra.mxu0 %v573_v22  ;;  %v206_v27 = vpop.permute.xlu0 %205  ;;  %v575_v28 = vpack.c.bf16 %v225_v25, %v213_v24 }
  0xb5   : > { %v224_v29 = vsel %vm223_vm2, %v218_v26, %v674_v20  ;;  %v212_v30 = vsel %vm211_vm3, %v206_v27, %v669_v13  ;;  %592 = vmatpush3.bf16.msra.mxu1 %v591_v23 }
  0xb6   : > { %v577_v31 = vpack.c.bf16 %v224_v29, %v212_v30  ;;  %576 = vmatprep.subr.bf16.mxu0 %v575_v28  ;;  %593 = vmatprep.subr.bf16.mxu1 %v797_v0 }
  0xb8   : > { %v683_v32 = vpop.permute.xlu1 %682  ;;  %578 = vmatpush1.bf16.msra.mxu0 %v577_v31  ;;  %v678_v33 = vpop.permute.xlu0 %677 }
  0xb9   : > { %v685_v34 = vunpack.i.h.bf16 %v683_v32  ;;  %v684_v35 = vunpack.i.l.bf16 %v683_v32  ;;  %v680_v36 = vunpack.i.h.bf16 %v678_v33  ;;  %v679_v37 = vunpack.i.l.bf16 %v678_v33 }
  0xbb   : > { %v594_v38 = vpack.c.bf16 %v685_v34, %v680_v36  ;;  %v237_v39 = vsel %vm235_vm5, %v679_v37, %v680_v36  ;;  %v249_v40 = vsel %vm247_vm4, %v684_v35, %v685_v34 }
  0xbc   : > { %v242_v41 = vpop.permute.xlu1 %241  ;;  %v230_v42 = vpop.permute.xlu0 %229  ;;  %v579_v43 = vpack.c.bf16 %v249_v40, %v237_v39 }
  0xbd   : > { %v248_v44 = vsel %vm247_vm4, %v242_v41, %v684_v35  ;;  %v236_v45 = vsel %vm235_vm5, %v230_v42, %v679_v37  ;;  %595 = vmatpush3.bf16.msra.mxu1 %v594_v38 }
  0xbe   : > { %v581_v46 = vpack.c.bf16 %v248_v44, %v236_v45  ;;  %580 = vmatprep.subr.bf16.mxu0 %v579_v43  ;;  %596 = vmatprep.subr.bf16.mxu1 %v797_v0 }
  0xc0   : > { %v693_v47 = vpop.permute.xlu1 %692  ;;  %v688_v48 = vpop.permute.xlu0 %687  ;;  %582 = vmatpush1.bf16.msra.mxu0 %v581_v46 }
  0xc1   : > { %v695_v49 = vunpack.i.h.bf16 %v693_v47  ;;  %v694_v50 = vunpack.i.l.bf16 %v693_v47  ;;  %v690_v51 = vunpack.i.h.bf16 %v688_v48  ;;  %v689_v52 = vunpack.i.l.bf16 %v688_v48 }
  0xc3   : > { %v597_v53 = vpack.c.bf16 %v695_v49, %v690_v51  ;;  %v261_v54 = vsel %vm259_vm7, %v689_v52, %v690_v51  ;;  %v273_v55 = vsel %vm271_vm6, %v694_v50, %v695_v49 }
  0xc4   : > { %v266_v56 = vpop.permute.xlu1 %265  ;;  %v254_v57 = vpop.permute.xlu0 %253  ;;  %v583_v58 = vpack.c.bf16 %v273_v55, %v261_v54 }
  0xc5   : > { %v272_v59 = vsel %vm271_vm6, %v266_v56, %v694_v50  ;;  %v260_v60 = vsel %vm259_vm7, %v254_v57, %v689_v52  ;;  %598 = vmatpush3.bf16.msra.mxu1 %v597_v53 }
  0xc6   : > { %v585_v61 = vpack.c.bf16 %v272_v59, %v260_v60  ;;  %584 = vmatprep.subr.bf16.mxu0 %v583_v58  ;;  %566 = vmatprep.subr.mxu1 %v803_v5 }
  0xc8   : > { %v282_v63 = vpop.permute.xlu1 %281  ;;  %v280_v0 = vpop.permute.xlu0 %279  ;;  %586 = vmatpush1.bf16.msra.mxu0 %v585_v61 }
  0xc9   : > { %v285_v1 = vsel %vm283_vm8, %v280_v0, %v282_v63  ;;  %567 = vmatpush3.msra.mxu1 %v282_v63 }
  0xca   : > { %316 = vmatprep.subr.mxu0 %v285_v1  ;;  %569 = vmatmul.mubr.msk.f32.vlgmr.msra.gmra.mrb[0].mxu1 %vm296_vm9, %v289_v62 }
  0xcc   : > { %v278_v2 = vpop.permute.xlu0 %277 }
  0xcd   : > { %v284_v3 = vsel %vm283_vm8, %v278_v2, %v280_v0 }
  0xce   : > { %317 = vmatpush1.msra.mxu0 %v284_v3 }
  0xcf   : > { %535 = vmatmul.mubr.msk.f32.vlgmr.msra.gmra.mrb[0].mxu0 %vm296_vm9, %v289_v62 }
  0xd9   : > { %v294_v4 = vpop.permute.xlu1 %293 }
 0x19d   : > { %v437_v5 = vpop.f32.mrb[0].mxu1 }
 0x19e   : > { %v438_v6 = vadd.f32 %v437_v5, %v294_v4  ;;  %v570_v7 = vpop.f32.mrb[1].mxu1 }
 0x1a0   : > { %444 = vst.msk [vmem:[%s186_s26 + $0x10] sm:$0xff] %vm443_vm10, %v438_v6 }
 0x1a2   : > { %v366_v8 = vpop.f32.mrb[0].mxu0 }
 0x1a3   : > { %v367_v9 = vadd.f32 %v366_v8, %v294_v4  ;;  %v368_v10 = vpop.f32.mrb[1].mxu0 }
 0x1a4   : > { %v369_v11 = vadd.f32 %v368_v10, %v294_v4 }
 0x1a5   : > { %441 = vst [vmem:[%s186_s26] sm:$0xff] %v367_v9 }
 0x1a6   : > { %442 = vst [vmem:[%s186_s26 + $0x8] sm:$0xff] %v369_v11 }
 0x1a7   : > { %741 = shalt.err (!%p738_p4)
}
 0x1a8   : > { %s742_s28 = scalar_lea.hbm %s962_s6, 384  ;;  %s746_s11 = scalar_lea.hbm %s1009_s3, 768 }
 0x1a9   : > { %p743_p7 = scmp.ne.s32.totalorder %s962_s6, %s742_s28  ;;  %p747_p0 = scmp.lt.u32.totalorder %s962_s6, %s1009_s3 }
 0x1aa   : > { %p748_p1 = scmp.lt.u32.totalorder %s746_s11, %s742_s28  ;;  %p750_p6 = scmp.lt.u32.totalorder %s742_s28, %s962_s6 }
 0x1ab   : > { %p744_p8 = pnand %p743_p7, %p1017_p11 }
 0x1ac   : > { %p749_p3 = por %p748_p1, %p747_p0 }
 0x1ad   : > { %p745_p9 = pneg %p744_p8 }
 0x1ae   : > { %p751_p12 = por %p750_p6, %p749_p3 }
 0x1b0   : > { %p752_p13 = pnand %p751_p12, %p745_p9 }
 0x1b2   : > { %755 = shalt.err (!%p752_p13)
}
 0x1b3   : > { %605 = dma.vmem_to_hbm [thread:$0]  (%p1017_p11), %s964_s5, 384, %s962_s6, %s446_s29  }
 0x1b4 PF: > { %s472_s20 = sand.u32 1, %s782_s12   ;;  %p1018_p5 = scmp.ne.s32.totalorder %s1013_s24, 0 }
 0x1b5   : > { %p1019_p10 = scmp.ge.s32.totalorder %s794_s15, 2  ;;  %s473_s25 = scalar_lea.sflag [#allocation4], %s472_s20 }
 0x1b7   : > { %p612_p2 = pnand %p1019_p10, %p1018_p5 }
 0x1b9   : > { %777 = dma.done.wait (!%p612_p2), %s473_s25, 384  }
 0x1ba   : > { %779 = vsyncadd (!%p612_p2), %s473_s25, 4294966912  ;;  %p16_p4 = scmp.ge.s32.totalorder %s855_s18, 4   ;;  %s1020_s12 = smov %s786_s13 }
 0x1bb   : > { %s1021_s13 = smov %s790_s14  ;;  %s1022_s14 = smov %s867_s21 }
 0x1bc   : > { %s1023_s15 = smov %s855_s18  ;;  %18 = sbr.rel (!%p16_p4) target bundleno = 5 (0x5), region = 77 }
 0x1c3   :  { %478 = vsyncpa [#allocation3], 1 }
 0x1c4   :  { %480 = vsyncpa [#allocation3 + $0x1], 1 }
 0x1c5   :  { %481 = vsyncpa [#allocation4], 1 }
 0x1c6   :  { %483 = vsyncpa [#allocation4 + $0x1], 1 }

</bundles_post_ra>
